<compile_context>
chip_gen: v6e
topology: v6e:2x2x1
jax: 0.10.0
libtpu: 0.0.40
codegen_flags: <defaults>
</compile_context>

<pallas_src>
import math
import functools

import jax
import jax.numpy as jnp
from jax.experimental import pallas as pl
from jax.experimental.pallas import tpu as pltpu

NEG_INF = -1e30  # large finite negative instead of -inf (NaN-safe masking)


# --------------------------------------------------------------------------- #
# Kernel 1: QKV projection                                                     #
# --------------------------------------------------------------------------- #
def _qkv_proj_kernel(x_ref, w_ref, b_ref, o_ref):
    x = x_ref[0]                                                   # (tq, C) bf16
    acc = jnp.dot(x, w_ref[...], preferred_element_type=jnp.float32)
    o_ref[0] = (acc + b_ref[...]).astype(o_ref.dtype)              # (tq, 3C)


# --------------------------------------------------------------------------- #
# Kernel 2: flash attention (online softmax) + fused output projection         #
# --------------------------------------------------------------------------- #
def _flash_attn_kernel(q_ref, k_ref, v_ref, wp_ref, bp_ref, o_ref,
                       m_scr, l_scr, acc_scr, *, tq, tk):
    qi = pl.program_id(1)
    ki = pl.program_id(2)

    @pl.when(ki == 0)
    def _init():
        m_scr[...] = jnp.full(m_scr.shape, NEG_INF, m_scr.dtype)
        l_scr[...] = jnp.zeros(l_scr.shape, l_scr.dtype)
        acc_scr[...] = jnp.zeros(acc_scr.shape, acc_scr.dtype)

    # Only kv tiles at or below the causal diagonal contribute.
    @pl.when(ki <= qi)
    def _step():
        q = q_ref[0]                                               # (H, tq, hd) bf16 (pre-scaled)
        k = k_ref[0]                                               # (H, tk, hd) bf16
        v = v_ref[0]                                               # (H, tk, hd) bf16

        # batched QK^T, contracting the last dims (no explicit transpose)
        s = jnp.einsum("hqd,hkd->hqk", q, k,
                       preferred_element_type=jnp.float32)         # (H, tq, tk) f32

        # causal mask (only the diagonal block has mixed entries; off-diagonal
        # blocks below the diagonal are fully visible)
        row = qi * tq + jax.lax.broadcasted_iota(jnp.int32, (tq, tk), 0)
        col = ki * tk + jax.lax.broadcasted_iota(jnp.int32, (tq, tk), 1)
        s = jnp.where((col <= row)[None, :, :], s, NEG_INF)

        # online softmax update
        m_prev = m_scr[...]
        m_new = jnp.maximum(m_prev, jnp.max(s, axis=2, keepdims=True))
        alpha = jnp.exp(m_prev - m_new)
        p = jnp.exp(s - m_new)                                     # f32
        l_scr[...] = alpha * l_scr[...] + jnp.sum(p, axis=2, keepdims=True)
        pv = jnp.einsum("hqk,hkd->hqd", p.astype(v.dtype), v,
                        preferred_element_type=jnp.float32)        # (H, tq, hd) f32
        acc_scr[...] = alpha * acc_scr[...] + pv
        m_scr[...] = m_new

    # The diagonal block is the last contributing kv tile for this query tile:
    # normalize, apply the head-decomposed output projection and write lane-dense (tq, C).
    @pl.when(ki == qi)
    def _finalize():
        y = acc_scr[...] * pl.reciprocal(l_scr[...], approx=True)  # (H, tq, hd) f32
        out_h = jnp.einsum("hqd,hdc->hqc", y.astype(jnp.bfloat16), wp_ref[...],
                           preferred_element_type=jnp.float32)     # (H, tq, C) f32
        o_ref[0] = (jnp.sum(out_h, axis=0) + bp_ref[...]).astype(o_ref.dtype)


# --------------------------------------------------------------------------- #
# Host-side parameter prep (hoisted: transposes / reshapes / scale fold / casts)#
# --------------------------------------------------------------------------- #
def _prepare_params(w_attn, b_attn, w_proj, b_proj, n_head):
    C3, C = w_attn.shape
    assert C3 == 3 * C and C % n_head == 0
    hd = C // n_head
    scale = 1.0 / math.sqrt(hd)

    # PyTorch Linear: y = x @ W.T + b  ->  store weights as (in, out).
    wqkv = jnp.asarray(w_attn, jnp.float32).T                      # (C, 3C)
    bqkv = jnp.asarray(b_attn, jnp.float32)
    # fold attention scale into the Q projection columns (free at runtime)
    col_scale = jnp.concatenate([jnp.full((C,), scale, jnp.float32),
                                 jnp.ones((2 * C,), jnp.float32)])
    wqkv = (wqkv * col_scale[None, :]).astype(jnp.bfloat16)
    bqkv = (bqkv * col_scale).reshape(1, 3 * C)                    # f32 (added post-accum)

    # output projection split per head:  y @ Wp.T == sum_h y_h @ Wp.T[h*hd:(h+1)*hd, :]
    wp3 = jnp.asarray(w_proj, jnp.float32).T.reshape(n_head, hd, C).astype(jnp.bfloat16)
    bp = jnp.asarray(b_proj, jnp.float32).reshape(1, C)
    return wqkv, bqkv, wp3, bp


# --------------------------------------------------------------------------- #
# Public entry point                                                           #
# --------------------------------------------------------------------------- #
def causal_self_attention(x, w_attn, b_attn, w_proj, b_proj, n_head, *, tile=128):
    """x: (B, T, C); w_attn: (3C, C), b_attn: (3C,), w_proj: (C, C), b_proj: (C,)
    (PyTorch Linear convention)."""
    B, T, C = x.shape
    hd = C // n_head
    tq = tk = min(tile, T)
    assert T % tq == 0, "sequence length must be a multiple of the tile size"
    nq, nk = T // tq, T // tk

    wqkv, bqkv, wp3, bp = _prepare_params(w_attn, b_attn, w_proj, b_proj, n_head)
    xb = x.astype(jnp.bfloat16)

    # ---- kernel 1: QKV projection ---------------------------------------- #
    qkv = pl.pallas_call(
        _qkv_proj_kernel,
        out_shape=jax.ShapeDtypeStruct((B, T, 3 * C), jnp.bfloat16),
        grid_spec=pltpu.PrefetchScalarGridSpec(
            num_scalar_prefetch=0,
            grid=(B, nq),
            in_specs=[
                pl.BlockSpec((1, tq, C), lambda b, i: (b, i, 0)),
                pl.BlockSpec((C, 3 * C), lambda b, i: (0, 0)),
                pl.BlockSpec((1, 3 * C), lambda b, i: (0, 0)),
            ],
            out_specs=pl.BlockSpec((1, tq, 3 * C), lambda b, i: (b, i, 0)),
        ),
        compiler_params=pltpu.CompilerParams(
            dimension_semantics=("parallel", "parallel")),
    )(xb, wqkv, bqkv)

    # layout plumbing only (same as the module's .view().transpose()): head-major q/k/v
    qkv = qkv.reshape(B, T, 3, n_head, hd)
    q = jnp.transpose(qkv[:, :, 0], (0, 2, 1, 3))                  # (B, H, T, hd), pre-scaled
    k = jnp.transpose(qkv[:, :, 1], (0, 2, 1, 3))
    v = jnp.transpose(qkv[:, :, 2], (0, 2, 1, 3))

    # ---- kernel 2: flash attention + output projection -------------------- #
    kernel = functools.partial(_flash_attn_kernel, tq=tq, tk=tk)
    out = pl.pallas_call(
        kernel,
        out_shape=jax.ShapeDtypeStruct((B, T, C), x.dtype),
        grid_spec=pltpu.PrefetchScalarGridSpec(
            num_scalar_prefetch=0,
            grid=(B, nq, nk),
            in_specs=[
                pl.BlockSpec((1, n_head, tq, hd), lambda b, qi, ki: (b, 0, qi, 0)),
                # clamp to the diagonal: kv tiles above it re-use the resident block
                # (no DMA), and their compute is skipped inside the kernel.
                pl.BlockSpec((1, n_head, tk, hd),
                             lambda b, qi, ki: (b, 0, jnp.minimum(ki, qi), 0)),
                pl.BlockSpec((1, n_head, tk, hd),
                             lambda b, qi, ki: (b, 0, jnp.minimum(ki, qi), 0)),
                pl.BlockSpec((n_head, hd, C), lambda b, qi, ki: (0, 0, 0)),
                pl.BlockSpec((1, C), lambda b, qi, ki: (0, 0)),
            ],
            out_specs=pl.BlockSpec((1, tq, C), lambda b, qi, ki: (b, qi, 0)),
            scratch_shapes=[
                pltpu.VMEM((n_head, tq, 1), jnp.float32),   # running max
                pltpu.VMEM((n_head, tq, 1), jnp.float32),   # running denominator
                pltpu.VMEM((n_head, tq, hd), jnp.float32),  # f32 output accumulator
            ],
        ),
        compiler_params=pltpu.CompilerParams(
            dimension_semantics=("parallel", "parallel", "arbitrary")),
    )(q, k, v, wp3, bp)
    return out


# --------------------------------------------------------------------------- #
# Pure-JAX reference matching the PyTorch forward                              #
# --------------------------------------------------------------------------- #
def _reference(x, w_attn, b_attn, w_proj, b_proj, n_head):
    B, T, C = x.shape
    hd = C // n_head
    qkv = x @ w_attn.T + b_attn
    q, k, v = jnp.split(qkv, 3, axis=2)
    q = q.reshape(B, T, n_head, hd).transpose(0, 2, 1, 3)
    k = k.reshape(B, T, n_head, hd).transpose(0, 2, 1, 3)
    v = v.reshape(B, T, n_head, hd).transpose(0, 2, 1, 3)
    s = jnp.einsum("bhtd,bhsd->bhts", q, k) / math.sqrt(hd)
    mask = jnp.tril(jnp.ones((T, T), dtype=bool))
    s = jnp.where(mask[None, None], s, -jnp.inf)
    p = jax.nn.softmax(s, axis=-1)
    y = jnp.einsum("bhts,bhsd->bhtd", p, v)
    y = y.transpose(0, 2, 1, 3).reshape(B, T, C)
    return y @ w_proj.T + b_proj


if __name__ == "__main__":
    # Small but tiling-exercising config: 2 query tiles x 2 kv tiles per batch element.
    B, T, C, n_head = 2, 256, 128, 4

    key = jax.random.PRNGKey(0)
    kx, kw1, kb1, kw2, kb2 = jax.random.split(key, 5)

    bound = 1.0 / math.sqrt(C)
    x = jax.random.normal(kx, (B, T, C), dtype=jnp.float32)
    w_attn = jax.random.uniform(kw1, (3 * C, C), jnp.float32, -bound, bound)
    b_attn = jax.random.uniform(kb1, (3 * C,), jnp.float32, -bound, bound)
    w_proj = jax.random.uniform(kw2, (C, C), jnp.float32, -bound, bound)
    b_proj = jax.random.uniform(kb2, (C,), jnp.float32, -bound, bound)

    out = causal_self_attention(x, w_attn, b_attn, w_proj, b_proj, n_head)
    out = jax.block_until_ready(out)

    ref = _reference(x, w_attn, b_attn, w_proj, b_proj, n_head)
    assert out.shape == (B, T, C)
    # bf16 matmul operands (f32 accumulation) vs pure-f32 reference -> relaxed tolerance
    assert jnp.allclose(out, ref, atol=5e-2, rtol=5e-2), float(jnp.max(jnp.abs(out - ref)))

    print("KERNEL_OK")
</pallas_src>

<mosaic_0001>
module attributes {stable_mosaic.version = 11 : i64} {
  func.func @_qkv_proj_kernel(%arg0: i32, %arg1: i32, %arg2: memref<1x128x128xbf16, #tpu.memory_space<vmem>>, %arg3: memref<128x384xbf16, #tpu.memory_space<vmem>>, %arg4: memref<1x384xf32, #tpu.memory_space<vmem>>, %arg5: memref<1x128x384xbf16, #tpu.memory_space<vmem>>) attributes {dimension_semantics = [#tpu.dimension_semantics<parallel>, #tpu.dimension_semantics<parallel>], iteration_bounds = array<i64: 2, 2>, scalar_prefetch = 0 : i64, scratch_operands = 0 : i64, tpu.core_type = #tpu.core_type<tc>, window_params = [{transform_indices = @transform_0, window_bounds = array<i64: 1, 128, 128>}, {pipeline_mode = #tpu.pipeline_mode<synchronous>, transform_indices = @transform_1, window_bounds = array<i64: 128, 384>}, {pipeline_mode = #tpu.pipeline_mode<synchronous>, transform_indices = @transform_2, window_bounds = array<i64: 1, 384>}, {transform_indices = @transform_3, window_bounds = array<i64: 1, 128, 384>}]} {
    %c0 = arith.constant 0 : index
    %c0_0 = arith.constant 0 : index
    %c0_1 = arith.constant 0 : index
    %0 = vector.load %arg2[%c0, %c0_0, %c0_1] : memref<1x128x128xbf16, #tpu.memory_space<vmem>>, vector<1x128x128xbf16>
    %1 = vector.shape_cast %0 : vector<1x128x128xbf16> to vector<128x128xbf16>
    %c0_2 = arith.constant 0 : index
    %c0_3 = arith.constant 0 : index
    %2 = vector.load %arg3[%c0_2, %c0_3] : memref<128x384xbf16, #tpu.memory_space<vmem>>, vector<128x384xbf16>
    %cst = arith.constant dense<0.000000e+00> : vector<128x384xf32>
    %3 = tpu.matmul %1, %2, %cst {dimension_numbers = #tpu.dot_dimension_numbers<[1], [0], [0], [1], [0, 0, 1, 1], [], []>} : vector<128x128xbf16>, vector<128x384xbf16>, vector<128x384xf32> -> vector<128x384xf32>
    %c0_4 = arith.constant 0 : index
    %c0_5 = arith.constant 0 : index
    %4 = vector.load %arg4[%c0_4, %c0_5] : memref<1x384xf32, #tpu.memory_space<vmem>>, vector<1x384xf32>
    %5 = vector.broadcast %4 : vector<1x384xf32> to vector<128x384xf32>
    %6 = arith.addf %3, %5 : vector<128x384xf32>
    %7 = arith.truncf %6 : vector<128x384xf32> to vector<128x384xbf16>
    %c0_6 = arith.constant 0 : index
    %c0_7 = arith.constant 0 : index
    %c0_8 = arith.constant 0 : index
    %8 = vector.load %arg5[%c0_6, %c0_7, %c0_8] : memref<1x128x384xbf16, #tpu.memory_space<vmem>>, vector<1x128x384xbf16>
    %9 = vector.shape_cast %8 : vector<1x128x384xbf16> to vector<128x384xbf16>
    %10 = vector.shape_cast %7 : vector<128x384xbf16> to vector<1x128x384xbf16>
    tpu.vector_store %arg5[%c0_6, %c0_7, %c0_8], %10 {strides = array<i32>} : memref<1x128x384xbf16, #tpu.memory_space<vmem>>, vector<1x128x384xbf16>,
    return
  }
  func.func @transform_0(%arg0: i32, %arg1: i32) -> (i32, i32, i32) {
    %c0_i32 = arith.constant 0 : i32
    %c0_i32_0 = arith.constant 0 : i32
    return %arg0, %arg1, %c0_i32 : i32, i32, i32
  }
  func.func @transform_1(%arg0: i32, %arg1: i32) -> (i32, i32) {
    %c0_i32 = arith.constant 0 : i32
    %c0_i32_0 = arith.constant 0 : i32
    %c0_i32_1 = arith.constant 0 : i32
    return %c0_i32, %c0_i32_0 : i32, i32
  }
  func.func @transform_2(%arg0: i32, %arg1: i32) -> (i32, i32) {
    %c0_i32 = arith.constant 0 : i32
    %c0_i32_0 = arith.constant 0 : i32
    %c0_i32_1 = arith.constant 0 : i32
    return %c0_i32, %c0_i32_0 : i32, i32
  }
  func.func @transform_3(%arg0: i32, %arg1: i32) -> (i32, i32, i32) {
    %c0_i32 = arith.constant 0 : i32
    %c0_i32_0 = arith.constant 0 : i32
    return %arg0, %arg1, %c0_i32 : i32, i32, i32
  }
}

</mosaic_0001>

<bundles_post_ra>
// kernel: tpu_custom_call.1
= control target key start
LH: loop header
LB: loop body
LE: loop exit
PB: predicated region body
PF: predicated region fallthrough
CT: control target
= control target key end

     0   :  { %s1779_s0 = inlined_call_operand.hbm [shape: bf16[2,256,128], index: 0, kind: input, shape index: {}]   ;;  %s1780_s1 = inlined_call_operand.hbm [shape: bf16[128,384], index: 1, kind: input, shape index: {}]   ;;  %s1781_s2 = inlined_call_operand.vmem [shape: f32[1,384], index: 2, kind: input, shape index: {}]   ;;  %s1782_s3 = inlined_call_operand.hbm [shape: bf16[2,256,384], index: 3, kind: output, shape index: {}]  }
   0x1   :  { %1788 = sst [smem:[#allocation15_spill]] %s1780_s1 }
   0x2   :  { %8 = vsyncpa [#allocation3], 0 }
   0x3   :  { %10 = vsyncpa [#allocation3 + $0x1], 0 }
   0x4   :  { %11 = vsyncpa [#allocation6], 0 }
   0x5   :  { %12 = vsyncpa [#allocation4], 0 }
   0x6   :  { %14 = vsyncpa [#allocation4 + $0x1], 0  ;;  %s1471_s12 = smov 0   ;;  %s1473_s13 = smov 0  }
   0x7   :  { %s1475_s14 = smov 0   ;;  %s1477_s15 = smov 0  }
   0x8   :  { %s1479_s16 = smov 0   ;;  %s1481_s17 = smov 0  }
   0x9   :  { %s1483_s18 = smov 0   ;;  %s1485_s19 = smov 0  }
   0xa LB: > { %1789 = sst [smem:[#allocation11_spill]] %s1411_s12  ;;  %s985_s20 = sadd.s32 4294967295, %s1439_s19   ;;  %s1439_s19 = sphi %s1485_s19, %s20_s19   ;;  %s1435_s18 = sphi %s1483_s18, %s1812_s18   ;;  %s1431_s17 = sphi %s1481_s17, %s1807_s17   ;;  %s1427_s16 = sphi %s1479_s16, %s1811_s16   ;;  %s1423_s15 = sphi %s1477_s15, %s1806_s15   ;;  %s1419_s14 = sphi %s1475_s14, %s1810_s14   ;;  %s1415_s13 = sphi %s1473_s13, %s1809_s13   ;;  %s1411_s12 = sphi %s1471_s12, %s1808_s12  }
   0xb   : > { %1790 = sst [smem:[#allocation12_spill]] %s1431_s17  ;;  %s986_s21 = sadd.s32 4294967294, %s1439_s19  }
   0xc   : > { %p54_p0 = scmp.ne.s32.totalorder %s1415_s13, %s1411_s12  ;;  %p1515_p1 = scmp.eq.s32.totalorder %s985_s20, 0 }
   0xd   : > { %p1519_p2 = scmp.eq.s32.totalorder %s985_s20, 3  ;;  %p128_p3 = scmp.eq.s32.totalorder %s986_s21, 3 }
   0xe   : > { %p1525_p4 = por %p1515_p1, %p54_p0  ;;  %p987_p5 = scmp.ge.s32.totalorder %s1439_s19, 1 }
   0xf   : > { %p1530_p6 = por %p128_p3, %p54_p0  ;;  %p135_p7 = scmp.lt.s32.totalorder %s1439_s19, 5 }
  0x10   : > { %s1793_s24 = scalar_select %p1525_p4, 1, 0 }
  0x11   : > { %s1794_s25 = scalar_select %p1530_p6, 1, 0 }
  0x12   : > { %p1535_p8 = pnand %p987_p5, %p135_p7  ;;  %s1441_s27 = smov [#allocation5]  }
  0x13   : > { %1795 = sst [smem:[#allocation13_spill]] %s1794_s25  ;;  %s147_s28 = sshll.u32 %s1441_s27, 4  ;;  %s148_s28 = int_to_ptr.vmem [resolvable:$true] %s147_s28 }
  0x14   : > { %p1157_p9 = pneg %p1535_p8  ;;  %s1296_s29 = scalar_lea.vmem %s148_s28, 3072 }
  0x15   : > { %p1297_p12 = scmp.ne.s32.totalorder %s148_s28, %s1296_s29  ;;  %p1304_p3 = scmp.lt.s32.totalorder %s148_s28, %s148_s28 }
  0x16   : > { %p1158_p10 = pnand %p1157_p9, %p1515_p1  ;;  %p1305_p6 = scmp.lt.s32.totalorder %s1296_s29, %s1296_s29 }
  0x18   : > { %p1287_p11 = pneg %p1158_p10  ;;  %p1306_p4 = por %p1305_p6, %p1304_p3 }
  0x1a   : > { %p1299_p13 = pnand %p1297_p12, %p1287_p11 }
  0x1c   : > { %p1300_p0 = pneg %p1299_p13 }
  0x1e   : > { %p1307_p5 = pnand %p1306_p4, %p1300_p0 }
  0x20   : > { %1310 = shalt.err (!%p1307_p5)
}
  0x21   : > { %s1442_s30 = smov 192   ;;  %s1443_s4 = smov 12  }
  0x22   : > { %s1797_s1 = sld [smem:[#allocation15_spill]]  ;;  %s29_s7 = sadd.s32 1, %s1431_s17 }
  0x23   : > { %p30_p4 = scmp.ge.s32.totalorder %s29_s7, 2  ;;  %s32_s8 = sadd.s32 1, %s1435_s18 }
  0x24   : > { %s41_s9 = sadd.s32 1, %s1419_s14  ;;  %p48_p6 = scmp.ne.s32.totalorder %s1419_s14, %s1415_s13 }
  0x25   : > { %s1814_s7 = smov (%p30_p4, %s29_s7), 0  ;;  %s1816_s8 = smov (!%p30_p4, %s32_s8), %s1435_s18 }
  0x26   : > { %1798 = sst [smem:[#allocation14_spill]] %s1814_s7  ;;  %s37_s10 = ssub.s32 %s1431_s17, %s1814_s7 }
  0x27   : > { %p49_p7 = scmp.eq.s32.totalorder %s1439_s19, 0  ;;  %p34_p9 = scmp.ge.s32.totalorder %s1816_s8, 2 }
  0x28   : > { %1160 = dma.hbm_to_vmem [thread:$0]  (!%p1158_p10), %s1797_s1, 3072, %s148_s28, [#allocation6], %s1442_s30, %s1442_s30, %s1443_s4  }
  0x29   : > { %p1559_p11 = por %p1519_p2, %p48_p6  ;;  %p1563_p10 = por %p49_p7, %p48_p6 }
  0x2a   : > { %p1170_p12 = scmp.lt.s32.totalorder %s1439_s19, 4  ;;  %s1818_s8 = smov (%p34_p9, %s1816_s8), 0 }
  0x2b   : > { %s164_s21 = sand.u32 1, %s1419_s14   ;;  %s991_s27 = sshll.u32 %s1431_s17, 4 }
  0x2c   : > { %s36_s28 = ssub.s32 %s1435_s18, %s1818_s8  ;;  %s990_s30 = sshll.u32 %s164_s21, 6 }
  0x2d   : > { %s38_s29 = sor.u32 %s37_s10, %s36_s28  ;;  %s992_s23 = sshll.u32 %s1435_s18, 5 }
  0x2e   : > { %p39_p13 = scmp.eq.s32.totalorder %s38_s29, 0  ;;  %s168_s4 = scalar_lea.vmem [#allocation2], %s990_s30 }
  0x2f   : > { %s177_s5 = sshll.u32 %s168_s4, 4  ;;  %s174_s1 = sadd.s32 %s992_s23, %s991_s27  ;;  %s178_s5 = int_to_ptr.vmem [resolvable:$true] %s177_s5 }
  0x30   : > { %s1576_s6 = scalar_select %p39_p13, %s1419_s14, %s41_s9  }
  0x31   : > { %s993_s7 = sshll.u32 %s174_s1, 6  ;;  %p1582_p2 = pnand %p1170_p12, %p1563_p10 }
  0x32   : > { %s176_s10 = scalar_lea.hbm %s1779_s0, %s993_s7  ;;  %s165_s28 = scalar_lea.sflag [#allocation3], %s164_s21 }
  0x33   : > { %p1313_p0 = pneg %p1582_p2  ;;  %s1324_s29 = scalar_lea.vmem %s178_s5, 1024 }
  0x34   : > { %p1325_p3 = scmp.ne.s32.totalorder %s178_s5, %s1324_s29  ;;  %s1444_s9 = smov [#allocation2]  }
  0x35   : > { %s1329_s1 = sshll.u32 %s1444_s9, 4  ;;  %s1330_s1 = int_to_ptr.vmem [resolvable:$false] %s1329_s1 }
  0x36   : > { %p1327_p5 = pnand %p1325_p3, %p1313_p0  ;;  %s1331_s20 = scalar_lea.vmem %s1330_s1, 2048 }
  0x37   : > { %p1332_p6 = scmp.lt.s32.totalorder %s178_s5, %s1330_s1  ;;  %p1333_p7 = scmp.lt.s32.totalorder %s1331_s20, %s1324_s29 }
  0x38   : > { %p1328_p4 = pneg %p1327_p5 }
  0x39   : > { %p1334_p9 = por %p1333_p7, %p1332_p6 }
  0x3b   : > { %p1335_p10 = pnand %p1334_p9, %p1328_p4 }
  0x3d   : > { %1338 = shalt.err (!%p1335_p10)
}
  0x3e   : > { %s1445_s27 = smov 64   ;;  %s1446_s12 = smov 4  }
  0x3f   : > { %1164 = dma.hbm_to_vmem [thread:$0]  (!%p1582_p2), %s176_s10, 1024, %s178_s5, %s165_s28, %s1445_s27, %s1445_s27, %s1446_s12  }
  0x40   : > { %189 = sbr.rel (%p1535_p8) target bundleno = 378 (0x17a), region = 32  ;;  %s1596_s17 = sand.u32 (!%p1535_p8), 1, %s1415_s13  }
  0x41   : > { %s995_s7 = sshll.u32 (!%p1535_p8), %s1596_s17, 6  ;;  %s192_s21 = scalar_lea.sflag (!%p1535_p8), [#allocation3], %s1596_s17 }
  0x42   : > { %s1600_s30 = scalar_lea.vmem (!%p1535_p8), [#allocation2], %s995_s7  ;;  %p1802_p12 = scmp.ne.s32.totalorder (!%p1535_p8), %s1793_s24, 0 }
  0x45   : > { %1398 = dma.done.wait (%p1802_p12), %s192_s21, 1024  }
  0x46   : > { %1400 = vsyncadd (%p1802_p12), %s192_s21, 4294966272 }
  0x47   : > { %1402 = dma.done.wait (%p1515_p1), [#allocation6], 3072  }
  0x48   : > { %1404 = vsyncadd (%p1515_p1), [#allocation6], 4294964224  ;;  %v1447_v0 = vmov 0   ;;  %v1245_v1 = vld [vmem:[#allocation5 + $0xac] ss:$12 sps:$4 sm:$0xff]   ;;  %v1271_v12 = vld [vmem:[%s1600_s30] sm:$0xff]   ;;  %v275_v33 = vlaneseq }
  0x49   : > { %498 = vmatprep.mubr.bf16.mxu0 %v1447_v0  ;;  %v1247_v2 = vld [vmem:[#allocation5 + $0xa8] ss:$12 sps:$4 sm:$0xff]   ;;  %466 = vmatprep.subr.bf16.mxu0 %v1245_v1  ;;  %v1250_v4 = vld [vmem:[#allocation5 + $0x90] ss:$12 sps:$4 sm:$0xff]   ;;  %v1253_v6 = vld [vmem:[#allocation5 + $0x78] ss:$12 sps:$4 sm:$0xff]  }
  0x4a   : > { %v1248_v3 = vld [vmem:[#allocation5 + $0x94] ss:$12 sps:$4 sm:$0xff]   ;;  %467 = vmatpush1.bf16.msra.mxu0 %v1247_v2  ;;  %v1251_v5 = vld [vmem:[#allocation5 + $0x7c] ss:$12 sps:$4 sm:$0xff]   ;;  %v1254_v7 = vld [vmem:[#allocation5 + $0x64] ss:$12 sps:$4 sm:$0xff]   ;;  %1130 = vmatprep.mubr.bf16.mxu1 %v1271_v12 }
  0x4b   : > { %468 = vmatprep.subr.bf16.mxu0 %v1248_v3  ;;  %v1266_v8 = vld [vmem:[#allocation5 + $0xb0] ss:$12 sps:$4 sm:$0xff]   ;;  %v1256_v9 = vld [vmem:[#allocation5 + $0x60] ss:$12 sps:$4 sm:$0xff]   ;;  %v1270_v11 = vld [vmem:[#allocation5 + $0x98] ss:$12 sps:$4 sm:$0xff]  }
  0x4c   : > { %v1257_v10 = vld [vmem:[#allocation5 + $0x4c] ss:$12 sps:$4 sm:$0xff]   ;;  %1114 = vmatprep.subr.bf16.mxu1 %v1266_v8  ;;  %v1259_v14 = vld [vmem:[#allocation5 + $0x48] ss:$12 sps:$4 sm:$0xff]   ;;  %v1262_v17 = vld [vmem:[#allocation5 + $0x30] ss:$12 sps:$4 sm:$0xff]  }
  0x4d   : > { %1115 = vmatpush3.bf16.msra.mxu1 %v1266_v8  ;;  %v1272_v13 = vld [vmem:[#allocation5 + $0x80] ss:$12 sps:$4 sm:$0xff]   ;;  %v1273_v16 = vld [vmem:[#allocation5 + $0x68] ss:$12 sps:$4 sm:$0xff]   ;;  %v1275_v19 = vld [vmem:[#allocation5 + $0x50] ss:$12 sps:$4 sm:$0xff]  }
  0x4e   : > { %469 = vmatpush1.bf16.msra.mxu0 %v1250_v4  ;;  %1116 = vmatprep.subr.bf16.mxu1 %v1270_v11  ;;  %v1260_v15 = vld [vmem:[#allocation5 + $0x34] ss:$12 sps:$4 sm:$0xff]   ;;  %v1263_v18 = vld [vmem:[#allocation5 + $0x1c] ss:$12 sps:$4 sm:$0xff]   ;;  %v1265_v20 = vld [vmem:[#allocation5 + $0x18] ss:$12 sps:$4 sm:$0xff]  }
  0x4f   : > { %470 = vmatprep.subr.bf16.mxu0 %v1251_v5  ;;  %v1267_v21 = vld [vmem:[#allocation5 + $0x4] ss:$12 sps:$4 sm:$0xff]   ;;  %v1269_v23 = vld [vmem:[#allocation5] ss:$12 sps:$4 sm:$0xff]   ;;  %v1279_v25 = vld [vmem:[#allocation5 + $0x8] ss:$12 sps:$4 sm:$0xff]  }
  0x50   : > { %v1276_v22 = vld [vmem:[#allocation5 + $0x38] ss:$12 sps:$4 sm:$0xff]   ;;  %v1278_v24 = vld [vmem:[#allocation5 + $0x20] ss:$12 sps:$4 sm:$0xff]   ;;  %v1277_v27 = vld [vmem:[%s1600_s30 + $0x10] sm:$0xff]   ;;  %v276_v34 = vshrl.u32 %v275_v33, 7 }
  0x51   : > { %1117 = vmatpush3.bf16.msra.mxu1 %v1270_v11  ;;  %v1274_v26 = vld [vmem:[%s1600_s30 + $0x8] sm:$0xff]   ;;  %v1280_v28 = vld [vmem:[%s1600_s30 + $0x18] sm:$0xff]   ;;  %v1281_v29 = vld [vmem:[%s1600_s30 + $0x20] sm:$0xff]   ;;  %s1146_s25 = smul.u32 192, %s1596_s17  ;;  %s869_s9 = scalar_lea.sflag [#allocation4], %s1596_s17 }
  0x52   : > { %471 = vmatpush1.bf16.msra.mxu0 %v1253_v6  ;;  %1118 = vmatprep.subr.bf16.mxu1 %v1272_v13  ;;  %v1283_v30 = vld [vmem:[%s1600_s30 + $0x30] sm:$0xff]   ;;  %v1282_v31 = vld [vmem:[%s1600_s30 + $0x28] sm:$0xff]   ;;  %v1284_v32 = vld [vmem:[%s1600_s30 + $0x38] sm:$0xff]   ;;  %v277_v35 = vsub.s32 0, %v276_v34  ;;  %v281_v36 = vsub.s32 1, %v276_v34  ;;  %v285_v44 = vsub.s32 2, %v276_v34 }
  0x53   : > { %472 = vmatprep.subr.bf16.mxu0 %v1254_v7  ;;  %v273_v37 = vld [vmem:[%s1781_s2] sm:$0x7]  ;;  %s1636_s26 = scalar_lea.vmem [#allocation7], %s1146_s25  ;;  %s1147_s23 = smul.u32 48, %s1423_s15 }
  0x54   : > { %v1629_v38 = vrot.slane %v273_v37, %v277_v35  ;;  %v1631_v39 = vrot.slane %v273_v37, %v281_v36  ;;  %v1641_v50 = vrot.slane %v273_v37, %v285_v44  ;;  %s1148_s4 = smul.u32 96, %s1427_s16  ;;  %s885_s16 = sshll.u32 %s1636_s26, 4  ;;  %s1725_s16 = int_to_ptr.vmem [resolvable:$true] %s885_s16 }
  0x55   : > { %1119 = vmatpush3.bf16.msra.mxu1 %v1272_v13  ;;  %s1339_s1 = scalar_lea.vmem %s1725_s16, 3072  ;;  %s1448_s20 = smov [#allocation7]  }
  0x56   : > { %473 = vmatpush1.bf16.msra.mxu0 %v1256_v9  ;;  %1120 = vmatprep.subr.bf16.mxu1 %v1273_v16  ;;  %s882_s5 = sadd.s32 %s1148_s4, %s1147_s23  ;;  %p1340_p1 = scmp.ne.s32.totalorder %s1725_s16, %s1339_s1 }
  0x57   : > { %474 = vmatprep.subr.bf16.mxu0 %v1257_v10  ;;  %s1063_s15 = sshll.u32 %s882_s5, 6  ;;  %s1343_s27 = sshll.u32 %s1448_s20, 4  ;;  %s1344_s27 = int_to_ptr.vmem [resolvable:$false] %s1343_s27 }
  0x58   : > { %s1723_s29 = scalar_lea.hbm %s1782_s3, %s1063_s15  ;;  %p1341_p8 = pnand %p1340_p1, %p1559_p11 }
  0x59   : > { %1121 = vmatpush3.bf16.msra.mxu1 %v1273_v16  ;;  %s1345_s12 = scalar_lea.vmem %s1344_s27, 6144  ;;  %p1346_p2 = scmp.lt.s32.totalorder %s1725_s16, %s1344_s27 }
  0x5a   : > { %475 = vmatpush1.bf16.msra.mxu0 %v1259_v14  ;;  %1122 = vmatprep.subr.bf16.mxu1 %v1275_v19  ;;  %p1342_p13 = pneg %p1341_p8  ;;  %p1347_p0 = scmp.lt.s32.totalorder %s1345_s12, %s1339_s1 }
  0x5b   : > { %476 = vmatprep.subr.bf16.mxu0 %v1260_v15 }
  0x5c   : > { %p1348_p3 = por %p1347_p0, %p1346_p2 }
  0x5d   : > { %1123 = vmatpush3.bf16.msra.mxu1 %v1275_v19 }
  0x5e   : > { %477 = vmatpush1.bf16.msra.mxu0 %v1262_v17  ;;  %1124 = vmatprep.subr.bf16.mxu1 %v1276_v22  ;;  %p1349_p5 = pnand %p1348_p3, %p1342_p13 }
  0x5f   : > { %478 = vmatprep.subr.bf16.mxu0 %v1263_v18 }
  0x61   : > { %1125 = vmatpush3.bf16.msra.mxu1 %v1276_v22 }
  0x62   : > { %479 = vmatpush1.bf16.msra.mxu0 %v1265_v20  ;;  %1126 = vmatprep.subr.bf16.mxu1 %v1278_v24 }
  0x63   : > { %480 = vmatprep.subr.bf16.mxu0 %v1267_v21 }
  0x65   : > { %1127 = vmatpush3.bf16.msra.mxu1 %v1278_v24 }
  0x66   : > { %481 = vmatpush1.bf16.msra.mxu0 %v1269_v23  ;;  %1128 = vmatprep.subr.bf16.mxu1 %v1279_v25 }
  0x69   : > { %499 = vmatmul.mubr.bf16.vlgmr.msra.gmra.mxu0 %v1271_v12  ;;  %1129 = vmatpush3.bf16.msra.mxu1 %v1279_v25 }
  0x6a   : > { %508 = vmatprep.mubr.bf16.mxu0 %v1447_v0 }
  0x6c   : > { %1131 = vmatmul.mubr.bf16.vlgmr.msra.gmra.mxu1 %v1274_v26 }
  0x6d   : > { %1134 = vmatprep.mubr.bf16.mxu1 %v1277_v27 }
  0x71   : > { %509 = vmatmul.mubr.bf16.gmra.mxu0 %v1274_v26 }
  0x72   : > { %518 = vmatprep.mubr.bf16.mxu0 %v1447_v0 }
  0x74   : > { %1135 = vmatmul.mubr.bf16.gmra.mxu1 %v1280_v28 }
  0x75   : > { %1138 = vmatprep.mubr.bf16.mxu1 %v1281_v29 }
  0x79   : > { %519 = vmatmul.mubr.bf16.gmra.mxu0 %v1277_v27 }
  0x7a   : > { %528 = vmatprep.mubr.bf16.mxu0 %v1447_v0 }
  0x7c   : > { %1139 = vmatmul.mubr.bf16.gmra.mxu1 %v1282_v31 }
  0x7d   : > { %1142 = vmatprep.mubr.bf16.mxu1 %v1283_v30 }
  0x81   : > { %529 = vmatmul.mubr.bf16.gmra.mxu0 %v1280_v28 }
  0x82   : > { %538 = vmatprep.mubr.bf16.mxu0 %v1447_v0 }
  0x84   : > { %1143 = vmatmul.mubr.bf16.gmra.mxu1 %v1284_v32 }
  0x89   : > { %539 = vmatmul.mubr.bf16.gmra.mxu0 %v1281_v29 }
  0x8a   : > { %548 = vmatprep.mubr.bf16.mxu0 %v1447_v0 }
  0x91   : > { %549 = vmatmul.mubr.bf16.gmra.mxu0 %v1282_v31 }
  0x92   : > { %558 = vmatprep.mubr.bf16.mxu0 %v1447_v0 }
  0x99   : > { %559 = vmatmul.mubr.bf16.gmra.mxu0 %v1283_v30 }
  0x9a   : > { %568 = vmatprep.mubr.bf16.mxu0 %v1447_v0 }
  0xa1   : > { %569 = vmatmul.mubr.bf16.gmra.mxu0 %v1284_v32 }
 0x129   : > { %v500_v40 = vpop.f32.mrf.mxu0 }
 0x12a   : > { %v501_v42 = vadd.f32 %v500_v40, %v1629_v38 }
 0x12b   : > { %v502_v41 = vpop.f32.mrf.mxu0 }
 0x12c   : > { %v503_v43 = vadd.f32 %v502_v41, %v1631_v39  ;;  %v1132_v54 = vpop.f32.mrf.mxu1 }
 0x12d   : > { %v504_v45 = vpop.f32.mrf.mxu0  ;;  %v622_v57 = vadd.f32 %v1132_v54, %v1641_v50 }
 0x12e   : > { %v1066_v46 = vpack.c.bf16 %v503_v43, %v501_v42  ;;  %v505_v48 = vadd.f32 %v504_v45, %v1629_v38  ;;  %v613_v59 = vpop.f32.mrf.mxu1 }
 0x12f   : > { %v506_v47 = vpop.f32.mrf.mxu0  ;;  %v1071_v61 = vpack.c.bf16 %v622_v57, %v622_v57  ;;  %v614_v62 = vadd.f32 %v613_v59, %v1641_v50 }
 0x130   : > { %836 = vst [vmem:[%s1636_s26] sm:$0xff] %v1066_v46  ;;  %v507_v49 = vadd.f32 %v506_v47, %v1631_v39  ;;  %v1133_v0 = vpop.f32.mrf.mxu1 }
 0x131   : > { %v510_v51 = vpop.f32.mrf.mxu0  ;;  %841 = vst [vmem:[%s1636_s26 + $0x20] sm:$0xf] %v1071_v61  ;;  %v1067_v3 = vpack.c.bf16 %v614_v62, %v614_v62  ;;  %v625_v4 = vadd.f32 %v1133_v0, %v1641_v50 }
 0x132   : > { %v1068_v52 = vpack.c.bf16 %v507_v49, %v505_v48  ;;  %v511_v55 = vadd.f32 %v510_v51, %v1629_v38  ;;  %v616_v6 = vpop.f32.mrf.mxu1 }
 0x133   : > { %v512_v53 = vpop.f32.mrf.mxu0  ;;  %837 = vst [vmem:[%s1636_s26 + $0x8] sm:$0xf] %v1067_v3  ;;  %v1073_v8 = vpack.c.bf16 %v625_v4, %v625_v4  ;;  %v617_v9 = vadd.f32 %v616_v6, %v1641_v50 }
 0x134   : > { %838 = vst [vmem:[%s1636_s26 + $0xc] sm:$0xff] %v1068_v52  ;;  %v513_v56 = vadd.f32 %v512_v53, %v1631_v39  ;;  %v1136_v11 = vpop.f32.mrf.mxu1 }
 0x135   : > { %v514_v58 = vpop.f32.mrf.mxu0  ;;  %843 = vst [vmem:[%s1636_s26 + $0x2c] sm:$0xf] %v1073_v8  ;;  %v1069_v14 = vpack.c.bf16 %v617_v9, %v617_v9  ;;  %v638_v15 = vadd.f32 %v1136_v11, %v1641_v50 }
 0x136   : > { %v1070_v60 = vpack.c.bf16 %v513_v56, %v511_v55  ;;  %v515_v1 = vadd.f32 %v514_v58, %v1629_v38  ;;  %v629_v17 = vpop.f32.mrf.mxu1 }
 0x137   : > { %v516_v63 = vpop.f32.mrf.mxu0  ;;  %839 = vst [vmem:[%s1636_s26 + $0x14] sm:$0xf] %v1069_v14  ;;  %v1079_v19 = vpack.c.bf16 %v638_v15, %v638_v15  ;;  %v630_v20 = vadd.f32 %v629_v17, %v1641_v50 }
 0x138   : > { %840 = vst [vmem:[%s1636_s26 + $0x18] sm:$0xff] %v1070_v60  ;;  %v517_v2 = vadd.f32 %v516_v63, %v1631_v39  ;;  %v1137_v22 = vpop.f32.mrf.mxu1 }
 0x139   : > { %v520_v5 = vpop.f32.mrf.mxu0  ;;  %849 = vst [vmem:[%s1636_s26 + $0x50] sm:$0xf] %v1079_v19  ;;  %v1075_v25 = vpack.c.bf16 %v630_v20, %v630_v20  ;;  %v641_v26 = vadd.f32 %v1137_v22, %v1641_v50 }
 0x13a   : > { %v1072_v7 = vpack.c.bf16 %v517_v2, %v515_v1  ;;  %v521_v12 = vadd.f32 %v520_v5, %v1629_v38  ;;  %v632_v28 = vpop.f32.mrf.mxu1 }
 0x13b   : > { %v522_v10 = vpop.f32.mrf.mxu0  ;;  %845 = vst [vmem:[%s1636_s26 + $0x38] sm:$0xf] %v1075_v25  ;;  %v1081_v30 = vpack.c.bf16 %v641_v26, %v641_v26  ;;  %v633_v31 = vadd.f32 %v632_v28, %v1641_v50 }
 0x13c   : > { %842 = vst [vmem:[%s1636_s26 + $0x24] sm:$0xff] %v1072_v7  ;;  %v523_v13 = vadd.f32 %v522_v10, %v1631_v39  ;;  %v1140_v33 = vpop.f32.mrf.mxu1 }
 0x13d   : > { %v524_v16 = vpop.f32.mrf.mxu0  ;;  %851 = vst [vmem:[%s1636_s26 + $0x5c] sm:$0xf] %v1081_v30  ;;  %v1077_v36 = vpack.c.bf16 %v633_v31, %v633_v31  ;;  %v654_v37 = vadd.f32 %v1140_v33, %v1641_v50 }
 0x13e   : > { %v1074_v18 = vpack.c.bf16 %v523_v13, %v521_v12  ;;  %v525_v23 = vadd.f32 %v524_v16, %v1629_v38  ;;  %v645_v41 = vpop.f32.mrf.mxu1 }
 0x13f   : > { %v526_v21 = vpop.f32.mrf.mxu0  ;;  %847 = vst [vmem:[%s1636_s26 + $0x44] sm:$0xf] %v1077_v36  ;;  %v1087_v43 = vpack.c.bf16 %v654_v37, %v654_v37  ;;  %v646_v44 = vadd.f32 %v645_v41, %v1641_v50 }
 0x140   : > { %844 = vst [vmem:[%s1636_s26 + $0x30] sm:$0xff] %v1074_v18  ;;  %v527_v24 = vadd.f32 %v526_v21, %v1631_v39  ;;  %v1141_v46 = vpop.f32.mrf.mxu1 }
 0x141   : > { %v530_v27 = vpop.f32.mrf.mxu0  ;;  %857 = vst [vmem:[%s1636_s26 + $0x80] sm:$0xf] %v1087_v43  ;;  %v1083_v49 = vpack.c.bf16 %v646_v44, %v646_v44  ;;  %v657_v51 = vadd.f32 %v1141_v46, %v1641_v50 }
 0x142   : > { %v1076_v29 = vpack.c.bf16 %v527_v24, %v525_v23  ;;  %v531_v34 = vadd.f32 %v530_v27, %v1629_v38  ;;  %v648_v53 = vpop.f32.mrf.mxu1 }
 0x143   : > { %v532_v32 = vpop.f32.mrf.mxu0  ;;  %853 = vst [vmem:[%s1636_s26 + $0x68] sm:$0xf] %v1083_v49  ;;  %v1089_v55 = vpack.c.bf16 %v657_v51, %v657_v51  ;;  %v649_v56 = vadd.f32 %v648_v53, %v1641_v50 }
 0x144   : > { %846 = vst [vmem:[%s1636_s26 + $0x3c] sm:$0xff] %v1076_v29  ;;  %v533_v35 = vadd.f32 %v532_v32, %v1631_v39  ;;  %v1144_v58 = vpop.f32.mrf.mxu1 }
 0x145   : > { %v534_v40 = vpop.f32.mrf.mxu0  ;;  %859 = vst [vmem:[%s1636_s26 + $0x8c] sm:$0xf] %v1089_v55  ;;  %v1085_v61 = vpack.c.bf16 %v649_v56, %v649_v56  ;;  %v670_v62 = vadd.f32 %v1144_v58, %v1641_v50 }
 0x146   : > { %v1078_v42 = vpack.c.bf16 %v533_v35, %v531_v34  ;;  %v535_v47 = vadd.f32 %v534_v40, %v1629_v38  ;;  %v661_v0 = vpop.f32.mrf.mxu1 }
 0x147   : > { %v536_v45 = vpop.f32.mrf.mxu0  ;;  %855 = vst [vmem:[%s1636_s26 + $0x74] sm:$0xf] %v1085_v61  ;;  %v1095_v2 = vpack.c.bf16 %v670_v62, %v670_v62  ;;  %v662_v3 = vadd.f32 %v661_v0, %v1641_v50 }
 0x148   : > { %848 = vst [vmem:[%s1636_s26 + $0x48] sm:$0xff] %v1078_v42  ;;  %v537_v48 = vadd.f32 %v536_v45, %v1631_v39  ;;  %v1145_v5 = vpop.f32.mrf.mxu1 }
 0x149   : > { %v540_v52 = vpop.f32.mrf.mxu0  ;;  %865 = vst [vmem:[%s1636_s26 + $0xb0] sm:$0xf] %v1095_v2  ;;  %v1091_v8 = vpack.c.bf16 %v662_v3, %v662_v3  ;;  %v673_v9 = vadd.f32 %v1145_v5, %v1641_v50 }
 0x14a   : > { %v1080_v54 = vpack.c.bf16 %v537_v48, %v535_v47  ;;  %v541_v59 = vadd.f32 %v540_v52, %v1629_v38  ;;  %v664_v11 = vpop.f32.mrf.mxu1 }
 0x14b   : > { %v542_v57 = vpop.f32.mrf.mxu0  ;;  %861 = vst [vmem:[%s1636_s26 + $0x98] sm:$0xf] %v1091_v8  ;;  %v1097_v13 = vpack.c.bf16 %v673_v9, %v673_v9  ;;  %v665_v14 = vadd.f32 %v664_v11, %v1641_v50 }
 0x14c   : > { %850 = vst [vmem:[%s1636_s26 + $0x54] sm:$0xff] %v1080_v54  ;;  %v543_v60 = vadd.f32 %v542_v57, %v1631_v39 }
 0x14d   : > { %v544_v63 = vpop.f32.mrf.mxu0  ;;  %867 = vst [vmem:[%s1636_s26 + $0xbc] sm:$0xf] %v1097_v13  ;;  %v1093_v18 = vpack.c.bf16 %v665_v14, %v665_v14 }
 0x14e   : > { %v1082_v1 = vpack.c.bf16 %v543_v60, %v541_v59  ;;  %v545_v6 = vadd.f32 %v544_v63, %v1629_v38 }
 0x14f   : > { %v546_v4 = vpop.f32.mrf.mxu0  ;;  %863 = vst [vmem:[%s1636_s26 + $0xa4] sm:$0xf] %v1093_v18 }
 0x150   : > { %852 = vst [vmem:[%s1636_s26 + $0x60] sm:$0xff] %v1082_v1  ;;  %v547_v7 = vadd.f32 %v546_v4, %v1631_v39 }
 0x151   : > { %v550_v10 = vpop.f32.mrf.mxu0 }
 0x152   : > { %v1084_v12 = vpack.c.bf16 %v547_v7, %v545_v6  ;;  %v551_v16 = vadd.f32 %v550_v10, %v1629_v38 }
 0x153   : > { %v552_v15 = vpop.f32.mrf.mxu0 }
 0x154   : > { %854 = vst [vmem:[%s1636_s26 + $0x6c] sm:$0xff] %v1084_v12  ;;  %v553_v17 = vadd.f32 %v552_v15, %v1631_v39 }
 0x155   : > { %v554_v19 = vpop.f32.mrf.mxu0 }
 0x156   : > { %v1086_v20 = vpack.c.bf16 %v553_v17, %v551_v16  ;;  %v555_v22 = vadd.f32 %v554_v19, %v1629_v38 }
 0x157   : > { %v556_v21 = vpop.f32.mrf.mxu0 }
 0x158   : > { %856 = vst [vmem:[%s1636_s26 + $0x78] sm:$0xff] %v1086_v20  ;;  %v557_v50 = vadd.f32 %v556_v21, %v1631_v39 }
 0x159   : > { %v560_v23 = vpop.f32.mrf.mxu0 }
 0x15a   : > { %v1088_v24 = vpack.c.bf16 %v557_v50, %v555_v22  ;;  %v561_v26 = vadd.f32 %v560_v23, %v1629_v38 }
 0x15b   : > { %v562_v25 = vpop.f32.mrf.mxu0 }
 0x15c   : > { %858 = vst [vmem:[%s1636_s26 + $0x84] sm:$0xff] %v1088_v24  ;;  %v563_v27 = vadd.f32 %v562_v25, %v1631_v39 }
 0x15d   : > { %v564_v28 = vpop.f32.mrf.mxu0 }
 0x15e   : > { %v1090_v29 = vpack.c.bf16 %v563_v27, %v561_v26  ;;  %v565_v31 = vadd.f32 %v564_v28, %v1629_v38 }
 0x15f   : > { %v566_v30 = vpop.f32.mrf.mxu0 }
 0x160   : > { %860 = vst [vmem:[%s1636_s26 + $0x90] sm:$0xff] %v1090_v29  ;;  %v567_v32 = vadd.f32 %v566_v30, %v1631_v39 }
 0x161   : > { %v570_v33 = vpop.f32.mrf.mxu0 }
 0x162   : > { %v1092_v34 = vpack.c.bf16 %v567_v32, %v565_v31  ;;  %v571_v36 = vadd.f32 %v570_v33, %v1629_v38 }
 0x163   : > { %v572_v35 = vpop.f32.mrf.mxu0 }
 0x164   : > { %862 = vst [vmem:[%s1636_s26 + $0x9c] sm:$0xff] %v1092_v34  ;;  %v573_v37 = vadd.f32 %v572_v35, %v1631_v39 }
 0x165   : > { %v574_v40 = vpop.f32.mrf.mxu0 }
 0x166   : > { %v1094_v41 = vpack.c.bf16 %v573_v37, %v571_v36  ;;  %v575_v43 = vadd.f32 %v574_v40, %v1629_v38 }
 0x167   : > { %v576_v42 = vpop.f32.mrf.mxu0 }
 0x168   : > { %864 = vst [vmem:[%s1636_s26 + $0xa8] sm:$0xff] %v1094_v41  ;;  %v577_v44 = vadd.f32 %v576_v42, %v1631_v39 }
 0x16a   : > { %v1096_v45 = vpack.c.bf16 %v577_v44, %v575_v43 }
 0x16c   : > { %866 = vst [vmem:[%s1636_s26 + $0xb4] sm:$0xff] %v1096_v45 }
 0x16d   : > { %1352 = shalt.err (!%p1349_p5)
}
 0x16e   : > { %s1353_s7 = scalar_lea.hbm %s1723_s29, 3072  ;;  %s1357_s22 = scalar_lea.hbm %s1782_s3, 12288 }
 0x16f   : > { %p1354_p4 = scmp.ne.s32.totalorder %s1723_s29, %s1353_s7  ;;  %p1358_p9 = scmp.lt.s32.totalorder %s1723_s29, %s1782_s3 }
 0x170   : > { %p1359_p10 = scmp.lt.s32.totalorder %s1357_s22, %s1353_s7 }
 0x171   : > { %p1355_p6 = pnand %p1354_p4, %p1559_p11 }
 0x172   : > { %p1360_p12 = por %p1359_p10, %p1358_p9 }
 0x173   : > { %p1356_p7 = pneg %p1355_p6 }
 0x175   : > { %p1361_p1 = pnand %p1360_p12, %p1356_p7 }
 0x177   : > { %1364 = shalt.err (!%p1361_p1)
}
 0x178   : > { %s1449_s26 = smov 192   ;;  %s1450_s23 = smov 12  }
 0x179   : > { %1155 = dma.vmem_to_hbm [thread:$0]  (%p1559_p11), %s1725_s16, 3072, %s1723_s29, %s869_s9, %s1449_s26, %s1449_s26, %s1450_s23  }
 0x17a PF: > { %s1803_s4 = sld [smem:[#allocation11_spill]]  ;;  %p1172_p8 = scmp.ge.s32.totalorder %s1439_s19, 2 }
 0x17b   : > { %s1804_s5 = sld [smem:[#allocation13_spill]] }
 0x180   : > { %s900_s15 = sand.u32 1, %s1803_s4  }
 0x181   : > { %p1805_p13 = scmp.ne.s32.totalorder %s1804_s5, 0  ;;  %s901_s10 = scalar_lea.sflag [#allocation4], %s900_s15 }
 0x183   : > { %p1166_p2 = pnand %p1172_p8, %p1805_p13 }
 0x185   : > { %p1167_p0 = pneg %p1166_p2 }
 0x187   : > { %1406 = dma.done.wait (%p1167_p0), %s901_s10, 3072  }
 0x188   : > { %1408 = vsyncadd (%p1167_p0), %s901_s10, 4294964224  ;;  %s20_s19 = sadd.s32 1, %s1439_s19   ;;  %s1806_s15 = sld [smem:[#allocation12_spill]] }
 0x189   : > { %p17_p3 = scmp.ge.s32.totalorder %s20_s19, 6   ;;  %s1807_s17 = sld [smem:[#allocation14_spill]] }
 0x18a   : > { %s1808_s12 = smov %s1415_s13  ;;  %s1809_s13 = smov %s1419_s14 }
 0x18b   : > { %s1810_s14 = smov %s1576_s6  ;;  %s1811_s16 = smov %s1435_s18 }
 0x18c   : > { %s1812_s18 = smov %s1818_s8  ;;  %19 = sbr.rel (!%p17_p3) target bundleno = 10 (0xa), region = 81 }
 0x191   :  { %906 = vsyncpa [#allocation3], 1 }
 0x192   :  { %908 = vsyncpa [#allocation3 + $0x1], 1 }
 0x193   :  { %909 = vsyncpa [#allocation6], 1 }
 0x194   :  { %910 = vsyncpa [#allocation4], 1 }
 0x195   :  { %912 = vsyncpa [#allocation4 + $0x1], 1 }

</bundles_post_ra>
